<compile_context>
chip_gen: v5e
topology: v5e:2x2
jax: 0.10.0
libtpu: 0.0.40
codegen_flags: <defaults>
</compile_context>

<pallas_src>
import jax
import jax.numpy as jnp
from jax import lax
from jax.experimental import pallas as pl
from jax.experimental.pallas import tpu as pltpu

EPS = 1e-5      # nn.BatchNorm2d default
LANES = 128
VMEM_LIMIT = 48 * 1024 * 1024   # <= v7x physical 64 MiB; plenty on v5e/v6e


def _round_up(x, m):
    return (x + m - 1) // m * m


# ------------------------------------------------------------------ pass 1
def _conv_stats_kernel(x0_ref, x1_ref, x2_ref, w_ref, z_ref, stats_ref):
    # x*_ref: (1, 1, W, Cin) bf16 input rows h, h+1, h+2 of one image.
    # w_ref:  (3, 3, Cin, cp) bf16 (resident; constant block index).
    # z_ref:  (1, 1, Wo, cp) bf16 conv output row.
    # stats_ref: (1, 1, 2, cp) f32 per-row (sum, sum-of-squares) partials.
    wo = z_ref.shape[2]
    cp = z_ref.shape[3]
    rows = (x0_ref[0, 0, :, :], x1_ref[0, 0, :, :], x2_ref[0, 0, :, :])
    acc = jnp.zeros((wo, cp), jnp.float32)
    for kh in range(3):
        row = rows[kh]                                   # (W, Cin) bf16
        for kw in range(3):
            acc = acc + jnp.dot(row[kw:kw + wo, :], w_ref[kh, kw, :, :],
                                preferred_element_type=jnp.float32)
    z_ref[0, 0, :, :] = acc.astype(z_ref.dtype)          # bf16 writeback
    # Fused per-channel partials from the *unrounded* f32 accumulator.
    stats_ref[0, 0, 0:1, :] = jnp.sum(acc, axis=0, keepdims=True)
    stats_ref[0, 0, 1:2, :] = jnp.sum(acc * acc, axis=0, keepdims=True)


# ------------------------------------------------------------------ pass 2
def _bn_relu_kernel(z_ref, scale_ref, shift_ref, o_ref):
    z = z_ref[...].astype(jnp.float32)
    o_ref[...] = jnp.maximum(z * scale_ref[...] + shift_ref[...], 0.0)


def conv_norm_relu(x_nchw, weight, bias, gamma, beta, *, tile_m=512,
                   return_nhwc=False):
    """x_nchw: (N, Cin, H, W) f32; weight: (Cout, Cin, 3, 3).

    Returns (N, Cout, Ho, Wo) f32 (or NHWC if return_nhwc=True)."""
    del bias  # cancelled exactly by training-mode BatchNorm (see header)

    N, Cin, H, W = x_nchw.shape
    Cout = weight.shape[0]
    KH = KW = 3
    Ho, Wo = H - KH + 1, W - KW + 1
    M = N * Ho * Wo
    cp = _round_up(Cout, LANES)                       # lane-dense channel dim

    # ---- glue: layout only. NCHW->NHWC + bf16 cast fused into one XLA op.
    x = jnp.transpose(x_nchw, (0, 2, 3, 1)).astype(jnp.bfloat16)   # (N,H,W,Cin)
    # Weight: (Cout, Cin, 3, 3) -> (3, 3, Cin, cp) bf16, lanes padded to 128.
    w4 = jnp.transpose(weight, (2, 3, 1, 0))
    w4 = jnp.pad(w4, ((0, 0), (0, 0), (0, 0), (0, cp - Cout))).astype(jnp.bfloat16)

    def _xspec(kh):
        return pl.BlockSpec((1, 1, W, Cin),
                            lambda n, h, kh=kh: (n, h + kh, 0, 0))

    params1 = pltpu.CompilerParams(
        dimension_semantics=("parallel", "parallel"),
        vmem_limit_bytes=VMEM_LIMIT,
    )

    # ---- pass 1: direct 3x3 conv (9-tap MXU accumulation) + partial stats ----
    z, stats = pl.pallas_call(
        _conv_stats_kernel,
        out_shape=(jax.ShapeDtypeStruct((N, Ho, Wo, cp), jnp.bfloat16),
                   jax.ShapeDtypeStruct((N, Ho, 2, cp), jnp.float32)),
        grid=(N, Ho),
        in_specs=[
            _xspec(0), _xspec(1), _xspec(2),
            pl.BlockSpec((KH, KW, Cin, cp), lambda n, h: (0, 0, 0, 0)),
        ],
        out_specs=(
            pl.BlockSpec((1, 1, Wo, cp), lambda n, h: (n, h, 0, 0)),
            pl.BlockSpec((1, 1, 2, cp), lambda n, h: (n, h, 0, 0)),
        ),
        compiler_params=params1,
        cost_estimate=pl.CostEstimate(
            flops=2 * M * (KH * KW * Cin) * cp,
            transcendentals=0,
            bytes_accessed=(3 * N * Ho * W * Cin * 2      # 3 shifted row reads
                            + KH * KW * Cin * cp * 2       # resident weight
                            + M * cp * 2                   # z writeback (bf16)
                            + N * Ho * 2 * cp * 4),        # stats partials
        ),
    )(x, x, x, w4)

    # ---- tiny per-channel finalize in f32 (padded channels contribute 0) -----
    # NOTE: var = E[x^2] - mean^2 from f32 partials; for extremely large M
    # consider shifted/Welford merging if BN accuracy matters.
    tot = jnp.sum(stats, axis=(0, 1))                    # (2, cp)
    cnt = jnp.float32(M)
    mean = tot[0] / cnt
    var = jnp.maximum(tot[1] / cnt - mean * mean, 0.0)   # biased (training mode)
    g = jnp.pad(gamma.astype(jnp.float32), (0, cp - Cout))
    b = jnp.pad(beta.astype(jnp.float32), (0, cp - Cout))
    scale = g * lax.rsqrt(var + EPS)
    shift = b - mean * scale
    scale = scale.reshape(1, cp)
    shift = shift.reshape(1, cp)

    # ---- pass 2: streaming y = max(z*scale + shift, 0), lane-dense tiles -----
    z2 = z.reshape(M, cp)                                # contiguous collapse
    if tile_m >= M:
        tm = M                                           # single full block
    else:
        tm = max(16, (tile_m // 16) * 16)                # bf16 sublane packing
    grid2 = pl.cdiv(M, tm)

    y = pl.pallas_call(
        _bn_relu_kernel,
        out_shape=jax.ShapeDtypeStruct((M, cp), jnp.float32),
        grid=(grid2,),
        in_specs=[
            pl.BlockSpec((tm, cp), lambda i: (i, 0)),
            pl.BlockSpec((1, cp), lambda i: (0, 0)),
            pl.BlockSpec((1, cp), lambda i: (0, 0)),
        ],
        out_specs=pl.BlockSpec((tm, cp), lambda i: (i, 0)),
        compiler_params=pltpu.CompilerParams(
            dimension_semantics=("parallel",),
            vmem_limit_bytes=VMEM_LIMIT,
        ),
        cost_estimate=pl.CostEstimate(
            flops=3 * M * cp,
            transcendentals=0,
            bytes_accessed=M * cp * 2 + M * cp * 4 + 2 * cp * 4,
        ),
    )(z2, scale, shift)

    y = y[:, :Cout].reshape(N, Ho, Wo, Cout)
    if return_nhwc:
        return y
    # Kept only for PyTorch NCHW interface parity (extra HBM round trip).
    return jnp.transpose(y, (0, 3, 1, 2))


def _reference(x_nchw, weight, bias, gamma, beta, *, cast_inputs_to_bf16=False):
    """Pure-JAX reference mirroring PyTorch Conv2d + BatchNorm2d(train) + ReLU."""
    xw = x_nchw.astype(jnp.float32)
    ww = weight.astype(jnp.float32)
    if cast_inputs_to_bf16:   # mirror the kernel's bf16 matmul-input rounding
        xw = xw.astype(jnp.bfloat16).astype(jnp.float32)
        ww = ww.astype(jnp.bfloat16).astype(jnp.float32)
    y = lax.conv_general_dilated(
        xw, ww, window_strides=(1, 1), padding="VALID",
        dimension_numbers=("NCHW", "OIHW", "NCHW"),
        precision=lax.Precision.HIGHEST)
    y = y + bias.reshape(1, -1, 1, 1)
    mean = jnp.mean(y, axis=(0, 2, 3), keepdims=True)
    var = jnp.mean((y - mean) ** 2, axis=(0, 2, 3), keepdims=True)
    y = (y - mean) * lax.rsqrt(var + EPS) * gamma.reshape(1, -1, 1, 1) + beta.reshape(1, -1, 1, 1)
    return jnp.maximum(y, 0.0)


if __name__ == "__main__":
    key = jax.random.PRNGKey(0)
    kx, kw, kb, kg, kbeta = jax.random.split(key, 5)

    N, Cin, H, W = 2, 4, 16, 16
    Cout = 8

    x = jax.random.normal(kx, (N, Cin, H, W), dtype=jnp.float32)
    weight = 0.2 * jax.random.normal(kw, (Cout, Cin, 3, 3), dtype=jnp.float32)
    bias = 0.1 * jax.random.normal(kb, (Cout,), dtype=jnp.float32)
    gamma = 1.0 + 0.1 * jax.random.normal(kg, (Cout,), dtype=jnp.float32)
    beta = 0.05 * jax.random.normal(kbeta, (Cout,), dtype=jnp.float32)

    out = jax.block_until_ready(conv_norm_relu(x, weight, bias, gamma, beta))
    assert out.shape == (N, Cout, H - 2, W - 2), out.shape

    # Check vs a reference with the same bf16 input rounding (isolates the
    # kernel's math; extra slack covers the bf16 z writeback between passes).
    ref_bf16 = _reference(x, weight, bias, gamma, beta, cast_inputs_to_bf16=True)
    err_bf16 = float(jnp.max(jnp.abs(out - ref_bf16)))
    assert jnp.allclose(out, ref_bf16, atol=2e-2, rtol=2e-2), err_bf16

    # Sanity check vs the full-f32 PyTorch-equivalent reference at bf16-scale tolerance.
    ref_f32 = _reference(x, weight, bias, gamma, beta, cast_inputs_to_bf16=False)
    err_f32 = float(jnp.max(jnp.abs(out - ref_f32)))
    assert jnp.allclose(out, ref_f32, atol=6e-2, rtol=6e-2), err_f32

    print("KERNEL_OK")
</pallas_src>

<mosaic_0001>
module attributes {stable_mosaic.version = 11 : i64} {
  func.func @_conv_stats_kernel(%arg0: i32, %arg1: i32, %arg2: memref<1x1x16x4xbf16, #tpu.memory_space<vmem>>, %arg3: memref<1x1x16x4xbf16, #tpu.memory_space<vmem>>, %arg4: memref<1x1x16x4xbf16, #tpu.memory_space<vmem>>, %arg5: memref<3x3x4x128xbf16, #tpu.memory_space<vmem>>, %arg6: memref<1x1x14x128xbf16, #tpu.memory_space<vmem>>, %arg7: memref<1x1x2x128xf32, #tpu.memory_space<vmem>>) attributes {dimension_semantics = [#tpu.dimension_semantics<parallel>, #tpu.dimension_semantics<parallel>], iteration_bounds = array<i64: 2, 14>, scalar_prefetch = 0 : i64, scratch_operands = 0 : i64, tpu.core_type = #tpu.core_type<tc>, window_params = [{transform_indices = @transform_0, window_bounds = array<i64: 1, 1, 16, 4>}, {transform_indices = @transform_1, window_bounds = array<i64: 1, 1, 16, 4>}, {transform_indices = @transform_2, window_bounds = array<i64: 1, 1, 16, 4>}, {pipeline_mode = #tpu.pipeline_mode<synchronous>, transform_indices = @transform_3, window_bounds = array<i64: 3, 3, 4, 128>}, {transform_indices = @transform_4, window_bounds = array<i64: 1, 1, 14, 128>}, {transform_indices = @transform_5, window_bounds = array<i64: 1, 1, 2, 128>}]} {
    %c0 = arith.constant 0 : index
    %c0_0 = arith.constant 0 : index
    %c0_1 = arith.constant 0 : index
    %c0_2 = arith.constant 0 : index
    %0 = vector.load %arg2[%c0, %c0_0, %c0_1, %c0_2] : memref<1x1x16x4xbf16, #tpu.memory_space<vmem>>, vector<1x1x16x4xbf16>
    %1 = vector.shape_cast %0 : vector<1x1x16x4xbf16> to vector<16x4xbf16>
    %c0_3 = arith.constant 0 : index
    %c0_4 = arith.constant 0 : index
    %c0_5 = arith.constant 0 : index
    %c0_6 = arith.constant 0 : index
    %2 = vector.load %arg3[%c0_3, %c0_4, %c0_5, %c0_6] : memref<1x1x16x4xbf16, #tpu.memory_space<vmem>>, vector<1x1x16x4xbf16>
    %3 = vector.shape_cast %2 : vector<1x1x16x4xbf16> to vector<16x4xbf16>
    %c0_7 = arith.constant 0 : index
    %c0_8 = arith.constant 0 : index
    %c0_9 = arith.constant 0 : index
    %c0_10 = arith.constant 0 : index
    %4 = vector.load %arg4[%c0_7, %c0_8, %c0_9, %c0_10] : memref<1x1x16x4xbf16, #tpu.memory_space<vmem>>, vector<1x1x16x4xbf16>
    %5 = vector.shape_cast %4 : vector<1x1x16x4xbf16> to vector<16x4xbf16>
    %cst = arith.constant 0.000000e+00 : f32
    %6 = vector.broadcast %cst : f32 to vector<14x128xf32>
    %7 = vector.extract_strided_slice %1 {offsets = [0, 0], sizes = [14, 4], strides = [1, 1]} : vector<16x4xbf16> to vector<14x4xbf16>
    %c0_11 = arith.constant 0 : index
    %c0_12 = arith.constant 0 : index
    %c0_13 = arith.constant 0 : index
    %c0_14 = arith.constant 0 : index
    %8 = vector.load %arg5[%c0_11, %c0_12, %c0_13, %c0_14] : memref<3x3x4x128xbf16, #tpu.memory_space<vmem>>, vector<1x1x4x128xbf16>
    %9 = vector.shape_cast %8 : vector<1x1x4x128xbf16> to vector<4x128xbf16>
    %cst_15 = arith.constant dense<0.000000e+00> : vector<14x128xf32>
    %10 = tpu.matmul %7, %9, %cst_15 {dimension_numbers = #tpu.dot_dimension_numbers<[1], [0], [0], [1], [0, 0, 1, 1], [], []>} : vector<14x4xbf16>, vector<4x128xbf16>, vector<14x128xf32> -> vector<14x128xf32>
    %11 = arith.addf %6, %10 : vector<14x128xf32>
    %12 = vector.extract_strided_slice %1 {offsets = [1, 0], sizes = [14, 4], strides = [1, 1]} : vector<16x4xbf16> to vector<14x4xbf16>
    %c0_16 = arith.constant 0 : index
    %c1 = arith.constant 1 : index
    %c0_17 = arith.constant 0 : index
    %c0_18 = arith.constant 0 : index
    %13 = vector.load %arg5[%c0_16, %c1, %c0_17, %c0_18] : memref<3x3x4x128xbf16, #tpu.memory_space<vmem>>, vector<1x1x4x128xbf16>
    %14 = vector.shape_cast %13 : vector<1x1x4x128xbf16> to vector<4x128xbf16>
    %cst_19 = arith.constant dense<0.000000e+00> : vector<14x128xf32>
    %15 = tpu.matmul %12, %14, %cst_19 {dimension_numbers = #tpu.dot_dimension_numbers<[1], [0], [0], [1], [0, 0, 1, 1], [], []>} : vector<14x4xbf16>, vector<4x128xbf16>, vector<14x128xf32> -> vector<14x128xf32>
    %16 = arith.addf %11, %15 : vector<14x128xf32>
    %17 = vector.extract_strided_slice %1 {offsets = [2, 0], sizes = [14, 4], strides = [1, 1]} : vector<16x4xbf16> to vector<14x4xbf16>
    %c0_20 = arith.constant 0 : index
    %c2 = arith.constant 2 : index
    %c0_21 = arith.constant 0 : index
    %c0_22 = arith.constant 0 : index
    %18 = vector.load %arg5[%c0_20, %c2, %c0_21, %c0_22] : memref<3x3x4x128xbf16, #tpu.memory_space<vmem>>, vector<1x1x4x128xbf16>
    %19 = vector.shape_cast %18 : vector<1x1x4x128xbf16> to vector<4x128xbf16>
    %cst_23 = arith.constant dense<0.000000e+00> : vector<14x128xf32>
    %20 = tpu.matmul %17, %19, %cst_23 {dimension_numbers = #tpu.dot_dimension_numbers<[1], [0], [0], [1], [0, 0, 1, 1], [], []>} : vector<14x4xbf16>, vector<4x128xbf16>, vector<14x128xf32> -> vector<14x128xf32>
    %21 = arith.addf %16, %20 : vector<14x128xf32>
    %22 = vector.extract_strided_slice %3 {offsets = [0, 0], sizes = [14, 4], strides = [1, 1]} : vector<16x4xbf16> to vector<14x4xbf16>
    %c1_24 = arith.constant 1 : index
    %c0_25 = arith.constant 0 : index
    %c0_26 = arith.constant 0 : index
    %c0_27 = arith.constant 0 : index
    %23 = vector.load %arg5[%c1_24, %c0_25, %c0_26, %c0_27] : memref<3x3x4x128xbf16, #tpu.memory_space<vmem>>, vector<1x1x4x128xbf16>
    %24 = vector.shape_cast %23 : vector<1x1x4x128xbf16> to vector<4x128xbf16>
    %cst_28 = arith.constant dense<0.000000e+00> : vector<14x128xf32>
    %25 = tpu.matmul %22, %24, %cst_28 {dimension_numbers = #tpu.dot_dimension_numbers<[1], [0], [0], [1], [0, 0, 1, 1], [], []>} : vector<14x4xbf16>, vector<4x128xbf16>, vector<14x128xf32> -> vector<14x128xf32>
    %26 = arith.addf %21, %25 : vector<14x128xf32>
    %27 = vector.extract_strided_slice %3 {offsets = [1, 0], sizes = [14, 4], strides = [1, 1]} : vector<16x4xbf16> to vector<14x4xbf16>
    %c1_29 = arith.constant 1 : index
    %c1_30 = arith.constant 1 : index
    %c0_31 = arith.constant 0 : index
    %c0_32 = arith.constant 0 : index
    %28 = vector.load %arg5[%c1_29, %c1_30, %c0_31, %c0_32] : memref<3x3x4x128xbf16, #tpu.memory_space<vmem>>, vector<1x1x4x128xbf16>
    %29 = vector.shape_cast %28 : vector<1x1x4x128xbf16> to vector<4x128xbf16>
    %cst_33 = arith.constant dense<0.000000e+00> : vector<14x128xf32>
    %30 = tpu.matmul %27, %29, %cst_33 {dimension_numbers = #tpu.dot_dimension_numbers<[1], [0], [0], [1], [0, 0, 1, 1], [], []>} : vector<14x4xbf16>, vector<4x128xbf16>, vector<14x128xf32> -> vector<14x128xf32>
    %31 = arith.addf %26, %30 : vector<14x128xf32>
    %32 = vector.extract_strided_slice %3 {offsets = [2, 0], sizes = [14, 4], strides = [1, 1]} : vector<16x4xbf16> to vector<14x4xbf16>
    %c1_34 = arith.constant 1 : index
    %c2_35 = arith.constant 2 : index
    %c0_36 = arith.constant 0 : index
    %c0_37 = arith.constant 0 : index
    %33 = vector.load %arg5[%c1_34, %c2_35, %c0_36, %c0_37] : memref<3x3x4x128xbf16, #tpu.memory_space<vmem>>, vector<1x1x4x128xbf16>
    %34 = vector.shape_cast %33 : vector<1x1x4x128xbf16> to vector<4x128xbf16>
    %cst_38 = arith.constant dense<0.000000e+00> : vector<14x128xf32>
    %35 = tpu.matmul %32, %34, %cst_38 {dimension_numbers = #tpu.dot_dimension_numbers<[1], [0], [0], [1], [0, 0, 1, 1], [], []>} : vector<14x4xbf16>, vector<4x128xbf16>, vector<14x128xf32> -> vector<14x128xf32>
    %36 = arith.addf %31, %35 : vector<14x128xf32>
    %37 = vector.extract_strided_slice %5 {offsets = [0, 0], sizes = [14, 4], strides = [1, 1]} : vector<16x4xbf16> to vector<14x4xbf16>
    %c2_39 = arith.constant 2 : index
    %c0_40 = arith.constant 0 : index
    %c0_41 = arith.constant 0 : index
    %c0_42 = arith.constant 0 : index
    %38 = vector.load %arg5[%c2_39, %c0_40, %c0_41, %c0_42] : memref<3x3x4x128xbf16, #tpu.memory_space<vmem>>, vector<1x1x4x128xbf16>
    %39 = vector.shape_cast %38 : vector<1x1x4x128xbf16> to vector<4x128xbf16>
    %cst_43 = arith.constant dense<0.000000e+00> : vector<14x128xf32>
    %40 = tpu.matmul %37, %39, %cst_43 {dimension_numbers = #tpu.dot_dimension_numbers<[1], [0], [0], [1], [0, 0, 1, 1], [], []>} : vector<14x4xbf16>, vector<4x128xbf16>, vector<14x128xf32> -> vector<14x128xf32>
    %41 = arith.addf %36, %40 : vector<14x128xf32>
    %42 = vector.extract_strided_slice %5 {offsets = [1, 0], sizes = [14, 4], strides = [1, 1]} : vector<16x4xbf16> to vector<14x4xbf16>
    %c2_44 = arith.constant 2 : index
    %c1_45 = arith.constant 1 : index
    %c0_46 = arith.constant 0 : index
    %c0_47 = arith.constant 0 : index
    %43 = vector.load %arg5[%c2_44, %c1_45, %c0_46, %c0_47] : memref<3x3x4x128xbf16, #tpu.memory_space<vmem>>, vector<1x1x4x128xbf16>
    %44 = vector.shape_cast %43 : vector<1x1x4x128xbf16> to vector<4x128xbf16>
    %cst_48 = arith.constant dense<0.000000e+00> : vector<14x128xf32>
    %45 = tpu.matmul %42, %44, %cst_48 {dimension_numbers = #tpu.dot_dimension_numbers<[1], [0], [0], [1], [0, 0, 1, 1], [], []>} : vector<14x4xbf16>, vector<4x128xbf16>, vector<14x128xf32> -> vector<14x128xf32>
    %46 = arith.addf %41, %45 : vector<14x128xf32>
    %47 = vector.extract_strided_slice %5 {offsets = [2, 0], sizes = [14, 4], strides = [1, 1]} : vector<16x4xbf16> to vector<14x4xbf16>
    %c2_49 = arith.constant 2 : index
    %c2_50 = arith.constant 2 : index
    %c0_51 = arith.constant 0 : index
    %c0_52 = arith.constant 0 : index
    %48 = vector.load %arg5[%c2_49, %c2_50, %c0_51, %c0_52] : memref<3x3x4x128xbf16, #tpu.memory_space<vmem>>, vector<1x1x4x128xbf16>
    %49 = vector.shape_cast %48 : vector<1x1x4x128xbf16> to vector<4x128xbf16>
    %cst_53 = arith.constant dense<0.000000e+00> : vector<14x128xf32>
    %50 = tpu.matmul %47, %49, %cst_53 {dimension_numbers = #tpu.dot_dimension_numbers<[1], [0], [0], [1], [0, 0, 1, 1], [], []>} : vector<14x4xbf16>, vector<4x128xbf16>, vector<14x128xf32> -> vector<14x128xf32>
    %51 = arith.addf %46, %50 : vector<14x128xf32>
    %52 = arith.truncf %51 : vector<14x128xf32> to vector<14x128xbf16>
    %c0_54 = arith.constant 0 : index
    %c0_55 = arith.constant 0 : index
    %c0_56 = arith.constant 0 : index
    %c0_57 = arith.constant 0 : index
    %53 = vector.load %arg6[%c0_54, %c0_55, %c0_56, %c0_57] : memref<1x1x14x128xbf16, #tpu.memory_space<vmem>>, vector<1x1x14x128xbf16>
    %54 = vector.shape_cast %53 : vector<1x1x14x128xbf16> to vector<14x128xbf16>
    %55 = vector.shape_cast %52 : vector<14x128xbf16> to vector<1x1x14x128xbf16>
    tpu.vector_store %arg6[%c0_54, %c0_55, %c0_56, %c0_57], %55 {strides = array<i32>} : memref<1x1x14x128xbf16, #tpu.memory_space<vmem>>, vector<1x1x14x128xbf16>,
    %cst_58 = arith.constant dense<0.000000e+00> : vector<128xf32>
    %56 = vector.multi_reduction <add>, %51, %cst_58 [0] : vector<14x128xf32> to vector<128xf32>
    %57 = vector.shape_cast %56 : vector<128xf32> to vector<1x128xf32>
    %c0_59 = arith.constant 0 : index
    %c0_60 = arith.constant 0 : index
    %c0_61 = arith.constant 0 : index
    %c0_62 = arith.constant 0 : index
    %58 = vector.load %arg7[%c0_59, %c0_60, %c0_61, %c0_62] : memref<1x1x2x128xf32, #tpu.memory_space<vmem>>, vector<1x1x1x128xf32>
    %59 = vector.shape_cast %58 : vector<1x1x1x128xf32> to vector<1x128xf32>
    %60 = vector.shape_cast %57 : vector<1x128xf32> to vector<1x1x1x128xf32>
    tpu.vector_store %arg7[%c0_59, %c0_60, %c0_61, %c0_62], %60 {strides = array<i32>} : memref<1x1x2x128xf32, #tpu.memory_space<vmem>>, vector<1x1x1x128xf32>,
    %61 = arith.mulf %51, %51 : vector<14x128xf32>
    %cst_63 = arith.constant dense<0.000000e+00> : vector<128xf32>
    %62 = vector.multi_reduction <add>, %61, %cst_63 [0] : vector<14x128xf32> to vector<128xf32>
    %63 = vector.shape_cast %62 : vector<128xf32> to vector<1x128xf32>
    %c0_64 = arith.constant 0 : index
    %c0_65 = arith.constant 0 : index
    %c1_66 = arith.constant 1 : index
    %c0_67 = arith.constant 0 : index
    %64 = vector.load %arg7[%c0_64, %c0_65, %c1_66, %c0_67] : memref<1x1x2x128xf32, #tpu.memory_space<vmem>>, vector<1x1x1x128xf32>
    %65 = vector.shape_cast %64 : vector<1x1x1x128xf32> to vector<1x128xf32>
    %66 = vector.shape_cast %63 : vector<1x128xf32> to vector<1x1x1x128xf32>
    tpu.vector_store %arg7[%c0_64, %c0_65, %c1_66, %c0_67], %66 {strides = array<i32>} : memref<1x1x2x128xf32, #tpu.memory_space<vmem>>, vector<1x1x1x128xf32>,
    return
  }
  func.func @transform_0(%arg0: i32, %arg1: i32) -> (i32, i32, i32, i32) {
    %c0_i32 = arith.constant 0 : i32
    %0 = arith.addi %arg1, %c0_i32 : i32
    %c0_i32_0 = arith.constant 0 : i32
    %c0_i32_1 = arith.constant 0 : i32
    %c0_i32_2 = arith.constant 0 : i32
    return %arg0, %0, %c0_i32_0, %c0_i32_1 : i32, i32, i32, i32
  }
  func.func @transform_1(%arg0: i32, %arg1: i32) -> (i32, i32, i32, i32) {
    %c1_i32 = arith.constant 1 : i32
    %0 = arith.addi %arg1, %c1_i32 : i32
    %c0_i32 = arith.constant 0 : i32
    %c0_i32_0 = arith.constant 0 : i32
    %c0_i32_1 = arith.constant 0 : i32
    return %arg0, %0, %c0_i32, %c0_i32_0 : i32, i32, i32, i32
  }
  func.func @transform_2(%arg0: i32, %arg1: i32) -> (i32, i32, i32, i32) {
    %c2_i32 = arith.constant 2 : i32
    %0 = arith.addi %arg1, %c2_i32 : i32
    %c0_i32 = arith.constant 0 : i32
    %c0_i32_0 = arith.constant 0 : i32
    %c0_i32_1 = arith.constant 0 : i32
    return %arg0, %0, %c0_i32, %c0_i32_0 : i32, i32, i32, i32
  }
  func.func @transform_3(%arg0: i32, %arg1: i32) -> (i32, i32, i32, i32) {
    %c0_i32 = arith.constant 0 : i32
    %c0_i32_0 = arith.constant 0 : i32
    %c0_i32_1 = arith.constant 0 : i32
    %c0_i32_2 = arith.constant 0 : i32
    %c0_i32_3 = arith.constant 0 : i32
    return %c0_i32, %c0_i32_0, %c0_i32_1, %c0_i32_2 : i32, i32, i32, i32
  }
  func.func @transform_4(%arg0: i32, %arg1: i32) -> (i32, i32, i32, i32) {
    %c0_i32 = arith.constant 0 : i32
    %c0_i32_0 = arith.constant 0 : i32
    %c0_i32_1 = arith.constant 0 : i32
    return %arg0, %arg1, %c0_i32, %c0_i32_0 : i32, i32, i32, i32
  }
  func.func @transform_5(%arg0: i32, %arg1: i32) -> (i32, i32, i32, i32) {
    %c0_i32 = arith.constant 0 : i32
    %c0_i32_0 = arith.constant 0 : i32
    %c0_i32_1 = arith.constant 0 : i32
    return %arg0, %arg1, %c0_i32, %c0_i32_0 : i32, i32, i32, i32
  }
}

</mosaic_0001>

<bundles_post_ra>
// kernel: tpu_custom_call.1
= control target key start
LH: loop header
LB: loop body
LE: loop exit
PB: predicated region body
PF: predicated region fallthrough
CT: control target
= control target key end

     0   :  { %s1272_s0 = inlined_call_operand.vmem [shape: bf16[2,16,16,4], index: 0, kind: input, shape index: {}]   ;;  %s1273_s1 = inlined_call_operand.vmem [shape: bf16[2,16,16,4], index: 1, kind: input, shape index: {}]   ;;  %s1274_s2 = inlined_call_operand.vmem [shape: bf16[2,16,16,4], index: 2, kind: input, shape index: {}]   ;;  %s1275_s3 = inlined_call_operand.vmem [shape: bf16[3,3,4,128], index: 3, kind: input, shape index: {}]   ;;  %s1276_s4 = inlined_call_operand.vmem [shape: bf16[2,14,14,128], index: 4, kind: output, shape index: {0}]   ;;  %s1277_s5 = inlined_call_operand.hbm [shape: f32[2,14,2,128], index: 5, kind: output, shape index: {1}]  }
   0x1   :  { %1281 = sst [smem:[#allocation8_spill]] %s1272_s0 }
   0x2   :  { %11 = vsyncpa [#allocation3], 0 }
   0x3   :  { %13 = vsyncpa [#allocation3 + $0x1], 0  ;;  %s1083_s18 = smov 0   ;;  %s1085_s19 = smov 0  }
   0x4   :  { %s1087_s20 = smov 0   ;;  %s1089_s21 = smov 0  }
   0x5   :  { %s1091_s22 = smov 0   ;;  %s1093_s23 = smov 0  }
   0x6   :  { %s1095_s24 = smov 0   ;;  %s1097_s25 = smov 0  }
   0x7 LB: > { %1282 = sst [smem:[#allocation5_spill]] %s1047_s24  ;;  %s831_s26 = sadd.s32 4294967295, %s1051_s25   ;;  %s1051_s25 = sphi %s1097_s25, %s19_s25   ;;  %s1047_s24 = sphi %s1095_s24, %s1290_s24   ;;  %s1043_s23 = sphi %s1093_s23, %s1295_s23   ;;  %s1039_s22 = sphi %s1091_s22, %s1288_s22   ;;  %s1035_s21 = sphi %s1089_s21, %s1294_s21   ;;  %s1031_s20 = sphi %s1087_s20, %s1293_s20   ;;  %s1027_s19 = sphi %s1085_s19, %s1292_s19   ;;  %s1023_s18 = sphi %s1083_s18, %s1291_s18  }
   0x8   : > { %s832_s27 = sadd.s32 4294967294, %s1051_s25   ;;  %s28_s28 = sadd.s32 1, %s1043_s23 }
   0x9   : > { %p29_p0 = scmp.ge.s32.totalorder %s28_s28, 14  ;;  %s31_s29 = sadd.s32 1, %s1047_s24 }
   0xa   : > { %p187_p1 = scmp.ne.s32.totalorder %s1031_s20, %s1027_s19  ;;  %p188_p2 = scmp.eq.s32.totalorder %s831_s26, 27 }
   0xb   : > { %s1297_s28 = smov (%p29_p0, %s28_s28), 0  ;;  %s1299_s29 = smov (!%p29_p0, %s31_s29), %s1047_s24 }
   0xc   : > { %1283 = sst [smem:[#allocation6_spill]] %s1297_s28  ;;  %s173_s30 = ssub.s32 %s1043_s23, %s1297_s28 }
   0xd   : > { %p1134_p3 = por %p188_p2, %p187_p1  ;;  %p33_p4 = scmp.ge.s32.totalorder %s1299_s29, 2 }
   0xe   : > { %p193_p5 = scmp.ne.s32.totalorder %s1027_s19, %s1023_s18  ;;  %p194_p6 = scmp.eq.s32.totalorder %s832_s27, 27 }
   0xf   : > { %p835_p7 = scmp.ge.s32.totalorder %s1051_s25, 1  ;;  %s1301_s29 = smov (%p33_p4, %s1299_s29), 0 }
  0x10   : > { %1285 = sst [smem:[#allocation7_spill]] %s1301_s29  ;;  %p1143_p8 = por %p194_p6, %p193_p5 }
  0x11   : > { %p255_p9 = scmp.lt.s32.totalorder %s1051_s25, 29  ;;  %s172_s8 = ssub.s32 %s1047_s24, %s1301_s29 }
  0x12   : > { %s177_s9 = sadd.s32 1, %s1031_s20  ;;  %s174_s10 = sor.u32 %s173_s30, %s172_s8 }
  0x13   : > { %p256_p10 = pnand %p835_p7, %p255_p9  ;;  %p175_p11 = scmp.eq.s32.totalorder %s174_s10, 0 }
  0x14   : > { %p316_p12 = scmp.lt.s32.totalorder (!%p256_p10), %s1039_s22, 1  ;;  %p318_p13 = scmp.lt.s32.totalorder (!%p256_p10), %s1035_s21, 15 }
  0x15   : > { %s1152_s11 = scalar_select %p175_p11, %s1031_s20, %s177_s9  }
  0x16   : > { %259 = sbr.rel (%p256_p10) target bundleno = 230 (0xe6), region = 36  ;;  %s325_s15 = sadd.s32 (!%p256_p10), 1, %s1035_s21 }
  0x17   : > { %p328_p0 = scmp.lt.s32.totalorder (!%p256_p10), %s325_s15, 15  ;;  %s336_s12 = sadd.s32 (!%p256_p10), 2, %s1035_s21 }
  0x18   : > { %p339_p1 = scmp.lt.s32.totalorder (!%p256_p10), %s336_s12, 15  ;;  %s1287_s0 = sld [smem:[#allocation8_spill]] (!%p256_p10) }
  0x19   : > { %p349_p2 = scmp.lt.s32.totalorder (!%p256_p10), %s1035_s21, 13 }
  0x1b   : > { %vm382_vm0 = vcmask 1041408   ;;  %v855_v0 = vld [vmem:[%s1275_s3 + $0x4] sm:$0x3]  ;;  %v857_v1 = vld [vmem:[%s1275_s3 + $0x6] sm:$0x3]  ;;  %s1168_s26 = scalar_select %p316_p12, %s1039_s22, 1 }
  0x1c   : > { %v426_v2 = vsel %vm382_vm0, %v855_v0, 0  ;;  %v455_v3 = vsel %vm382_vm0, %v857_v1, 0  ;;  %v848_v4 = vld [vmem:[%s1275_s3 + $0x2] sm:$0x3]  ;;  %v363_v6 = vld [vmem:[%s1275_s3] sm:$0x3] }
  0x1d   : > { %435 = vmatpush.bf16.msra.mxu2 %v426_v2  ;;  %464 = vmatpush.bf16.msra.mxu3 %v455_v3  ;;  %v384_v5 = vsel %vm382_vm0, %v848_v4, 0  ;;  %v863_v7 = vld [vmem:[%s1275_s3 + $0x8] sm:$0x3]  ;;  %s319_s10 = scalar_select %p318_p13, %s1035_s21, 15  ;;  %v403_v8 = vsel %vm382_vm0, %v363_v6, 0  ;;  %vm378_vm1 = vcmask 31744  }
  0x1e   : > { %393 = vmatpush.bf16.msra.mxu0 %v384_v5  ;;  %v485_v9 = vsel %vm382_vm0, %v863_v7, 0  ;;  %v867_v10 = vld [vmem:[%s1275_s3 + $0xc] sm:$0x3]  ;;  %s1184_s14 = sshll.u32 %s1168_s26, 5  ;;  %412 = vmatpush.bf16.msra.mxu1 %v403_v8  ;;  %v873_v12 = vld [vmem:[%s1275_s3 + $0xe] sm:$0x3] }
  0x1f   : > { %v539_v11 = vsel %vm382_vm0, %v867_v10, 0  ;;  %s837_s27 = sshll.u32 %s319_s10, 1  ;;  %v569_v13 = vsel %vm382_vm0, %v873_v12, 0  ;;  %v865_v14 = vld [vmem:[%s1275_s3 + $0xa] sm:$0x3]  ;;  %s1303_s15 = smov (!%p328_p0, %s325_s15), 15 }
  0x20   : > { %s322_s9 = sadd.s32 %s1184_s14, %s837_s27  ;;  %v510_v15 = vsel %vm382_vm0, %v865_v14, 0  ;;  %s1305_s12 = smov (!%p339_p1, %s336_s12), 15  ;;  %v875_v20 = vld [vmem:[%s1275_s3 + $0x10] sm:$0x3]  ;;  %vm616_vm2 = vcmask 1045504  }
  0x21   : > { %548 = vmatpush.bf16.msrb.mxu2 %v539_v11  ;;  %578 = vmatpush.bf16.msrb.mxu3 %v569_v13  ;;  %s839_s13 = sshll.u32 %s322_s9, 2  ;;  %s840_s30 = sshll.u32 %s1303_s15, 1  ;;  %v594_v24 = vsel %vm382_vm0, %v875_v20, 0 }
  0x22   : > { %494 = vmatpush.bf16.msrb.mxu0 %v485_v9  ;;  %519 = vmatpush.bf16.msrb.mxu1 %v510_v15  ;;  %s324_s10 = scalar_lea.vmem %s1287_s0, %s839_s13  ;;  %s332_s27 = sadd.s32 %s840_s30, %s1184_s14 }
  0x23   : > { %v881_v16 = vld [vmem:[%s324_s10] sm:$0xff]  ;;  %s843_s8 = sshll.u32 %s1305_s12, 1  ;;  %s842_s13 = sshll.u32 %s332_s27, 2 }
  0x24   : > { %v421_v17 = vrot.slane %v881_v16, 1  ;;  %v372_v18 = vshrl.u32 %v881_v16, 16  ;;  %v374_v19 = vshll.u32 %v881_v16, 16  ;;  %854 = vmatmul.msk.bf16.vlgmr.msra.gmra.mxu1 %vm378_vm1, %v881_v16  ;;  %s343_s16 = sadd.s32 %s843_s8, %s1184_s14  ;;  %s334_s0 = scalar_lea.vmem %s1273_s1, %s842_s13 }
  0x25   : > { %s845_s15 = sshll.u32 %s343_s16, 2  ;;  %v882_v22 = vld [vmem:[%s334_s0] sm:$0xff]  ;;  %s884_s24 = smul.u32 28, %s1168_s26 }
  0x26   : > { %856 = vmatmul.msk.bf16.vlgmr.msra.gmra.mxu2 %vm378_vm1, %v421_v17  ;;  %v376_v21 = vrot.slane %v374_v19, 1  ;;  %s345_s12 = scalar_lea.vmem %s1274_s2, %s845_s15  ;;  %862 = vmatmul.msk.bf16.vlgmr.msra.gmra.mxu3 %vm378_vm1, %v882_v22  ;;  %v477_v26 = vshll.u32 %v882_v22, 16  ;;  %v505_v28 = vrot.slane %v882_v22, 1  ;;  %v475_v29 = vshrl.u32 %v882_v22, 16  ;;  %s885_s26 = smul.u32 14, %s1039_s22 }
  0x27   : > { %v883_v25 = vld [vmem:[%s345_s12] sm:$0xff]  ;;  %s350_s0 = scalar_select %p349_p2, %s1035_s21, 13 }
  0x28   : > { %v377_v23 = vor.u32 %v376_v21, %v372_v18  ;;  %v561_v27 = vshll.u32 %v883_v25, 16  ;;  %v479_v30 = vrot.slane %v477_v26, 1  ;;  %v559_v31 = vshrl.u32 %v883_v25, 16  ;;  %s313_s9 = sand.u32 1, %s1027_s19   ;;  %s660_s13 = sadd.s32 %s1035_s21, %s885_s26 }
  0x29   : > { %v589_v35 = vrot.slane %v883_v25, 1  ;;  %s846_s28 = sshll.u32 %s350_s0, 1  ;;  %s836_s16 = sshll.u32 %s313_s9, 1 }
  0x2a   : > { %853 = vmatmul.msk.bf16.vlgmr.msra.gmra.mxu0 %vm378_vm1, %v377_v23  ;;  %v563_v32 = vrot.slane %v561_v27, 1  ;;  %v480_v33 = vor.u32 %v479_v30, %v475_v29  ;;  %s353_s29 = sadd.s32 %s884_s24, %s846_s28  ;;  %s878_s17 = sshll.u32 %s660_s13, 1 }
  0x2b   : > { %603 = vmatpush.bf16.msra.mxu0 %v594_v24  ;;  %s847_s14 = sshll.u32 %s353_s29, 2  ;;  %s662_s15 = scalar_lea.hbm %s1277_s5, %s878_s17 }
  0x2c   : > { %v564_v34 = vor.u32 %v563_v32, %v559_v31  ;;  %s355_s8 = scalar_lea.vmem %s1276_s4, %s847_s14  ;;  %s315_s12 = scalar_lea.vmem [#allocation2], %s836_s16 }
  0x2d   : > { %s664_s0 = sshll.u32 %s315_s12, 4  ;;  %s666_s24 = sshll.u32 %s662_s15, 4  ;;  %s665_s0 = int_to_ptr.vmem [resolvable:$true] %s664_s0  ;;  %s667_s24 = int_to_ptr.hbm [resolvable:$true] %s666_s24 }
  0x2e   : > { %s647_s21 = scalar_lea.sflag [#allocation3], %s313_s9  ;;  %s971_s28 = sshra.s32 %s667_s24, 4  ;;  %s972_s28 = int_to_ptr.hbm [resolvable:$true] %s971_s28 }
  0x2f   : > { %s973_s29 = scalar_lea.hbm %s972_s28, 2  ;;  %s977_s27 = scalar_lea.hbm %s1277_s5, 56 }
  0x30   : > { %p974_p4 = scmp.ne.s32.totalorder %s972_s28, %s973_s29  ;;  %p978_p7 = scmp.lt.s32.totalorder %s972_s28, %s1277_s5 }
  0x31   : > { %p979_p9 = scmp.lt.s32.totalorder %s977_s27, %s973_s29 }
  0x32   : > { %p975_p5 = pnand %p974_p4, %p1134_p3 }
  0x33   : > { %p980_p10 = por %p979_p9, %p978_p7 }
  0x34   : > { %866 = vmatmul.msk.bf16.vlgmr.msrb.gmra.mxu1 %vm378_vm1, %v505_v28  ;;  %p976_p6 = pneg %p975_p5 }
  0x36   : > { %872 = vmatmul.msk.bf16.vlgmr.msrb.gmra.mxu2 %vm378_vm1, %v883_v25  ;;  %874 = vmatmul.msk.bf16.vlgmr.msrb.gmra.mxu3 %vm378_vm1, %v564_v34  ;;  %p981_p11 = pnand %p980_p10, %p976_p6 }
  0x3a   : > { %864 = vmatmul.msk.bf16.vlgmr.msrb.gmra.mxu0 %vm378_vm1, %v480_v33 }
  0x4a   : > { %876 = vmatmul.msk.bf16.vlgmr.msra.gmra.mxu0 %vm378_vm1, %v589_v35 }
  0xa1   : > { %v414_v37 = vpop.f32.mrf.mxu1 }
  0xa7   : > { %v395_v36 = vpop.f32.mrf.mxu0 }
  0xa8   : > { %v415_v41 = vadd.f32 %v414_v37, %v395_v36 }
  0xa9   : > { %v437_v38 = vpop.f32.mrf.mxu2  ;;  %v466_v39 = vpop.f32.mrf.mxu3 }
  0xaa   : > { %v416_v42 = vpop.f32.mrf.mxu1  ;;  %v442_v43 = vadd.f32 %v437_v38, %v415_v41 }
  0xac   : > { %v471_v46 = vadd.f32 %v466_v39, %v442_v43 }
  0xaf   : > { %v397_v40 = vpop.f32.mrf.mxu0 }
  0xb0   : > { %v417_v47 = vadd.f32 %v416_v42, %v397_v40 }
  0xb1   : > { %v439_v44 = vpop.f32.mrf.mxu2  ;;  %v468_v48 = vpop.f32.mrf.mxu3 }
  0xb2   : > { %v521_v49 = vpop.f32.mrf.mxu1  ;;  %v443_v51 = vadd.f32 %v439_v44, %v417_v47 }
  0xb4   : > { %v472_v55 = vadd.f32 %v468_v48, %v443_v51 }
  0xb7   : > { %v496_v45 = vpop.f32.mrf.mxu0 }
  0xb8   : > { %v501_v50 = vadd.f32 %v496_v45, %v471_v46 }
  0xb9   : > { %v550_v52 = vpop.f32.mrf.mxu2  ;;  %v580_v56 = vpop.f32.mrf.mxu3 }
  0xba   : > { %v526_v53 = vadd.f32 %v521_v49, %v501_v50  ;;  %v523_v59 = vpop.f32.mrf.mxu1 }
  0xbc   : > { %v555_v57 = vadd.f32 %v550_v52, %v526_v53 }
  0xbe   : > { %v585_v60 = vadd.f32 %v580_v56, %v555_v57 }
  0xbf   : > { %v498_v54 = vpop.f32.mrf.mxu0 }
  0xc0   : > { %v502_v58 = vadd.f32 %v498_v54, %v472_v55 }
  0xc1   : > { %v552_v62 = vpop.f32.mrf.mxu2  ;;  %v582_v3 = vpop.f32.mrf.mxu3 }
  0xc2   : > { %v527_v61 = vadd.f32 %v523_v59, %v502_v58 }
  0xc4   : > { %v556_v1 = vadd.f32 %v552_v62, %v527_v61 }
  0xc6   : > { %v586_v4 = vadd.f32 %v582_v3, %v556_v1 }
  0xc7   : > { %v605_v63 = vpop.f32.mrf.mxu0 }
  0xc8   : > { %v610_v0 = vadd.f32 %v605_v63, %v585_v60 }
  0xca   : > { %v612_v2 = vpack.c.bf16 %v610_v0, %v610_v0  ;;  %v626_v10 = vmul.f32 %v610_v0, %v610_v0 }
  0xcc   : > { %614 = vst [vmem:[%s355_s8] sm:$0xf] %v612_v2 }
  0xcf   : > { %v607_v5 = vpop.f32.mrf.mxu0 }
  0xd0   : > { %v611_v6 = vadd.f32 %v607_v5, %v586_v4 }
  0xd2   : > { %v613_v7 = vpack.c.bf16 %v611_v6, %v611_v6  ;;  %v617_v8 = vsel %vm616_vm2, %v611_v6, 0.0  ;;  %v627_v9 = vmul.f32 %v611_v6, %v611_v6 }
  0xd3   : > { %v618_v11 = vadd.f32 %v617_v8, %v610_v0 }
  0xd4   : > { %615 = vst [vmem:[%s355_s8 + $0x4] sm:$0x7] %v613_v7  ;;  %v628_v12 = vsel %vm616_vm2, %v627_v9, 0.0 }
  0xd5   : > { %v619_v13 = vrot.slane %v618_v11, 4  ;;  %v629_v14 = vadd.f32 %v628_v12, %v626_v10 }
  0xd7   : > { %v620_v15 = vadd.f32 %v619_v13, %v618_v11  ;;  %v630_v16 = vrot.slane %v629_v14, 4 }
  0xd9   : > { %v621_v17 = vrot.slane %v620_v15, 2  ;;  %v631_v18 = vadd.f32 %v630_v16, %v629_v14 }
  0xdb   : > { %v622_v19 = vadd.f32 %v621_v17, %v620_v15  ;;  %v632_v20 = vrot.slane %v631_v18, 2 }
  0xdd   : > { %v623_v21 = vrot.slane %v622_v19, 1  ;;  %v633_v22 = vadd.f32 %v632_v20, %v631_v18 }
  0xdf   : > { %v624_v23 = vadd.f32 %v623_v21, %v622_v19  ;;  %v634_v24 = vrot.slane %v633_v22, 1 }
  0xe1   : > { %625 = vst [vmem:[%s315_s12] sm:$0x1] %v624_v23  ;;  %v635_v25 = vadd.f32 %v634_v24, %v633_v22 }
  0xe3   : > { %636 = vst [vmem:[%s315_s12 + $0x1] sm:$0x1] %v635_v25 }
  0xe4   : > { %984 = shalt.err (!%p981_p11)
}
  0xe5   : > { %886 = dma.vmem_to_hbm [thread:$0]  (%p1134_p3), %s665_s0, 32, %s667_s24, %s647_s21  }
  0xe6 PF: > { %p892_p12 = scmp.ge.s32.totalorder %s1051_s25, 2  ;;  %s690_s9 = sand.u32 1, %s1023_s18  }
  0xe7   : > { %s691_s13 = scalar_lea.sflag [#allocation3], %s690_s9 }
  0xe8   : > { %p889_p13 = pnand %p892_p12, %p1143_p8 }
  0xea   : > { %p890_p0 = pneg %p889_p13 }
  0xec   : > { %1018 = dma.done.wait (%p890_p0), %s691_s13, 32  }
  0xed   : > { %1020 = vsyncadd (%p890_p0), %s691_s13, 4294967264  ;;  %s19_s25 = sadd.s32 1, %s1051_s25   ;;  %s1288_s22 = sld [smem:[#allocation5_spill]] }
  0xee   : > { %p16_p1 = scmp.ge.s32.totalorder %s19_s25, 30   ;;  %s1289_s6 = sld [smem:[#allocation6_spill]] }
  0xef   : > { %s1290_s24 = sld [smem:[#allocation7_spill]]  ;;  %s1291_s18 = smov %s1027_s19 }
  0xf0   : > { %s1292_s19 = smov %s1031_s20  ;;  %s1293_s20 = smov %s1152_s11 }
  0xf1   : > { %s1294_s21 = smov %s1043_s23  ;;  %18 = sbr.rel (!%p16_p1) target bundleno = 7 (0x7), region = 97 }
  0xf4   : > { %s1295_s23 = smov %s1289_s6 }
  0xf6   :  { %697 = vsyncpa [#allocation3], 1 }
  0xf7   :  { %699 = vsyncpa [#allocation3 + $0x1], 1 }

</bundles_post_ra>
